<compile_context>
chip_gen: v6e
topology: v6e:2x2x1
jax: 0.10.0
libtpu: 0.0.40
codegen_flags: <defaults>
</compile_context>

<pallas_src>
import functools

import jax
import jax.numpy as jnp
from jax.experimental import pallas as pl
from jax.experimental.pallas import tpu as pltpu


def _round_up(x: int, m: int) -> int:
    return ((x + m - 1) // m) * m


def _vmem_budgets():
    """Per-generation byte budgets: (per-input-slab budget, vmem_limit_bytes)."""
    cap = None
    try:
        info = pltpu.get_tpu_info()
        cap = getattr(info, "vmem_capacity_bytes", None)
    except Exception:
        cap = None
    if cap is None:
        try:
            kind = jax.devices()[0].device_kind.lower()
        except Exception:
            kind = ""
        if ("v5" in kind) or ("v6" in kind):
            cap = 128 * 1024 * 1024
        else:
            cap = 64 * 1024 * 1024  # conservative (v7x-class) default
    if cap >= 96 * 1024 * 1024:
        # v5e / v6e: 128 MiB physical VMEM. Double-buffered input = 48 MiB.
        return 24 * 1024 * 1024, 64 * 1024 * 1024
    # v7x-class: 64 MiB VMEM per TensorCore. Double-buffered input = 32 MiB,
    # limit 48 MiB leaves headroom for output buffers and compiler scratch.
    return 16 * 1024 * 1024, 48 * 1024 * 1024


def _triplet_pair_partial_kernel(x_ref, out_ref, *,
                                 margin: float, batch_size: int, tile_b: int):
    # x_ref: (3, TB, D) tile in VMEM, native dtype. Upcast in-register.
    anchor = x_ref[0].astype(jnp.float32)      # (TB, D)
    positive = x_ref[1].astype(jnp.float32)    # (TB, D)
    negative = x_ref[2].astype(jnp.float32)    # (TB, D)

    dp = anchor - positive
    dn = anchor - negative

    # Per-sample squared L2 distances, shape (TB, 1), accumulated in f32.
    pos_dist = jnp.sum(dp * dp, axis=-1, keepdims=True)
    neg_dist = jnp.sum(dn * dn, axis=-1, keepdims=True)

    # triplet = max(0, 1 - neg / (pos + margin)); reciprocal goes to the EUP.
    inv = pl.reciprocal(pos_dist + jnp.float32(margin), approx=False)
    triplet = jnp.maximum(jnp.float32(0.0), jnp.float32(1.0) - neg_dist * inv)

    # Mask rows of the (possibly partial) boundary tile. Keep jnp.where (not a
    # multiply-by-mask) so garbage rows in the padded block cannot leak NaN/Inf.
    row = (pl.program_id(0) * tile_b
           + jax.lax.broadcasted_iota(jnp.int32, (tile_b, 1), 0))
    valid = row < batch_size
    t_partial = jnp.sum(jnp.where(valid, triplet, jnp.float32(0.0)))
    p_partial = jnp.sum(jnp.where(valid, pos_dist, jnp.float32(0.0)))

    # Single merged (1, 16, 128) output block: triplet partial in sublanes 0-7,
    # pair partial in sublanes 8-15. One unmasked, tiling-aligned store.
    sub = jax.lax.broadcasted_iota(jnp.int32, out_ref.shape, 1)
    out_ref[...] = jnp.where(sub < 8, t_partial, p_partial).astype(jnp.float32)


def triplet_and_pair_loss(x, batch_size: int, margin: float = 0.01,
                          pair_loss_weight_factor: float = 1.0,
                          tile_b: int | None = None):
    """JAX/Pallas equivalent of TripletAndPairLoss.forward.

    x: (3*batch_size, D) array (any float dtype; upcast to f32 in-kernel).
    Returns (triplet_loss, pair_loss) as float32 scalars.
    """
    three_b, d = x.shape
    assert three_b == 3 * batch_size, "x must have 3*batch_size rows"

    xs = x.reshape(3, batch_size, d)  # no dtype cast in the wrapper

    slab_budget, vmem_limit = _vmem_budgets()
    itemsize = jnp.dtype(xs.dtype).itemsize

    if tile_b is None:
        # Rows per tile from the byte budget: one input slab = 3*TB*D*itemsize.
        max_tb_bytes = max(8, ((slab_budget // (3 * d * itemsize)) // 8) * 8)
        # Cap so large B yields >= ~4 grid steps: lets ("parallel",) shard
        # tiles across both TensorCores on v7x and amortizes nothing extra
        # (per-step overhead ~0.35 us is negligible at these slab sizes).
        min_tiles = 4
        cap_for_parallel = _round_up(pl.cdiv(batch_size, min_tiles), 8)
        tile_b = min(max_tb_bytes, cap_for_parallel, _round_up(batch_size, 8))
    tile_b = int(max(8, tile_b))
    grid_b = pl.cdiv(batch_size, tile_b)

    kernel = functools.partial(
        _triplet_pair_partial_kernel,
        margin=float(margin),
        batch_size=int(batch_size),
        tile_b=tile_b,
    )

    parts = pl.pallas_call(
        kernel,
        out_shape=jax.ShapeDtypeStruct((grid_b, 16, 128), jnp.float32),
        grid_spec=pltpu.PrefetchScalarGridSpec(
            num_scalar_prefetch=0,
            grid=(grid_b,),
            in_specs=[pl.BlockSpec((3, tile_b, d), lambda i: (0, i, 0))],
            out_specs=pl.BlockSpec((1, 16, 128), lambda i: (i, 0, 0)),
        ),
        compiler_params=pltpu.CompilerParams(
            dimension_semantics=("parallel",),   # lets v7x shard tiles over 2 TCs
            vmem_limit_bytes=int(vmem_limit),
        ),
    )(xs)

    triplet_loss = jnp.sum(parts[:, 0, 0])
    pair_loss = jnp.float32(pair_loss_weight_factor) * jnp.sum(parts[:, 8, 0])
    return triplet_loss, pair_loss


def _reference(x, batch_size, margin=0.01, pair_loss_weight_factor=1.0):
    xf = x.astype(jnp.float32)
    anchor = xf[0:batch_size]
    positive = xf[batch_size:2 * batch_size]
    negative = xf[2 * batch_size:]
    pd = jnp.sum((anchor - positive) ** 2, axis=1)
    nd = jnp.sum((anchor - negative) ** 2, axis=1)
    tl = jnp.maximum(0.0, 1.0 - nd / (pd + margin))
    return jnp.sum(tl), pair_loss_weight_factor * jnp.sum(pd)


if __name__ == "__main__":
    margin = 0.01
    pair_loss_weight_factor = 1.0
    key = jax.random.PRNGKey(0)

    # Test 1: module-sized small case (single, padded tile).
    batch_size, hidden = 2, 32
    x = jax.random.normal(key, (3 * batch_size, hidden), dtype=jnp.float32)
    tl, plo = triplet_and_pair_loss(
        x, batch_size, margin=margin,
        pair_loss_weight_factor=pair_loss_weight_factor)
    tl, plo = jax.block_until_ready((tl, plo))
    tl_ref, plo_ref = _reference(x, batch_size, margin, pair_loss_weight_factor)
    assert jnp.allclose(tl, tl_ref, rtol=1e-5, atol=1e-5), (tl, tl_ref)
    assert jnp.allclose(plo, plo_ref, rtol=1e-5, atol=1e-5), (plo, plo_ref)

    # Test 2: explicit tile_b=8 -> multi-tile grid + boundary-tile masking.
    batch_size2, hidden2 = 20, 32
    x2 = jax.random.normal(jax.random.PRNGKey(0), (3 * batch_size2, hidden2),
                           dtype=jnp.float32)
    tl2, plo2 = triplet_and_pair_loss(
        x2, batch_size2, margin=margin,
        pair_loss_weight_factor=pair_loss_weight_factor, tile_b=8)
    tl2, plo2 = jax.block_until_ready((tl2, plo2))
    tl2_ref, plo2_ref = _reference(x2, batch_size2, margin,
                                   pair_loss_weight_factor)
    assert jnp.allclose(tl2, tl2_ref, rtol=1e-5, atol=1e-5), (tl2, tl2_ref)
    assert jnp.allclose(plo2, plo2_ref, rtol=1e-5, atol=1e-5), (plo2, plo2_ref)

    # Test 3: auto tile_b path -> multi-tile "parallel" grid (grid_b ~ 4) with
    # a partial last tile, exercising the byte-budget / min-tiles heuristic.
    batch_size3, hidden3 = 100, 64
    x3 = jax.random.normal(jax.random.PRNGKey(0), (3 * batch_size3, hidden3),
                           dtype=jnp.float32)
    tl3, plo3 = triplet_and_pair_loss(
        x3, batch_size3, margin=margin,
        pair_loss_weight_factor=pair_loss_weight_factor)
    tl3, plo3 = jax.block_until_ready((tl3, plo3))
    tl3_ref, plo3_ref = _reference(x3, batch_size3, margin,
                                   pair_loss_weight_factor)
    assert jnp.allclose(tl3, tl3_ref, rtol=1e-5, atol=1e-5), (tl3, tl3_ref)
    assert jnp.allclose(plo3, plo3_ref, rtol=1e-5, atol=1e-5), (plo3, plo3_ref)

    print("KERNEL_OK")
</pallas_src>

<mosaic_0001>
module attributes {stable_mosaic.version = 11 : i64} {
  func.func @_triplet_pair_partial_kernel(%arg0: i32, %arg1: memref<3x8x32xf32, #tpu.memory_space<vmem>>, %arg2: memref<1x16x128xf32, #tpu.memory_space<vmem>>) attributes {dimension_semantics = [#tpu.dimension_semantics<parallel>], iteration_bounds = array<i64: 1>, scalar_prefetch = 0 : i64, scratch_operands = 0 : i64, tpu.core_type = #tpu.core_type<tc>, window_params = [{transform_indices = @transform_0, window_bounds = array<i64: 3, 8, 32>}, {transform_indices = @transform_1, window_bounds = array<i64: 1, 16, 128>}]} {
    %c0 = arith.constant 0 : index
    %c0_0 = arith.constant 0 : index
    %c0_1 = arith.constant 0 : index
    %0 = vector.load %arg1[%c0, %c0_0, %c0_1] : memref<3x8x32xf32, #tpu.memory_space<vmem>>, vector<1x8x32xf32>
    %1 = vector.shape_cast %0 : vector<1x8x32xf32> to vector<8x32xf32>
    %c1 = arith.constant 1 : index
    %c0_2 = arith.constant 0 : index
    %c0_3 = arith.constant 0 : index
    %2 = vector.load %arg1[%c1, %c0_2, %c0_3] : memref<3x8x32xf32, #tpu.memory_space<vmem>>, vector<1x8x32xf32>
    %3 = vector.shape_cast %2 : vector<1x8x32xf32> to vector<8x32xf32>
    %c2 = arith.constant 2 : index
    %c0_4 = arith.constant 0 : index
    %c0_5 = arith.constant 0 : index
    %4 = vector.load %arg1[%c2, %c0_4, %c0_5] : memref<3x8x32xf32, #tpu.memory_space<vmem>>, vector<1x8x32xf32>
    %5 = vector.shape_cast %4 : vector<1x8x32xf32> to vector<8x32xf32>
    %6 = arith.subf %1, %3 : vector<8x32xf32>
    %7 = arith.subf %1, %5 : vector<8x32xf32>
    %8 = arith.mulf %6, %6 : vector<8x32xf32>
    %cst = arith.constant dense<0.000000e+00> : vector<8xf32>
    %9 = vector.multi_reduction <add>, %8, %cst [1] : vector<8x32xf32> to vector<8xf32>
    %10 = vector.shape_cast %9 : vector<8xf32> to vector<8x1xf32>
    %11 = arith.mulf %7, %7 : vector<8x32xf32>
    %cst_6 = arith.constant dense<0.000000e+00> : vector<8xf32>
    %12 = vector.multi_reduction <add>, %11, %cst_6 [1] : vector<8x32xf32> to vector<8xf32>
    %13 = vector.shape_cast %12 : vector<8xf32> to vector<8x1xf32>
    %cst_7 = arith.constant 0.00999999977 : f32
    %14 = vector.broadcast %cst_7 : f32 to vector<8x1xf32>
    %15 = arith.addf %10, %14 : vector<8x1xf32>
    %16 = tpu.reciprocal %15 : vector<8x1xf32> -> vector<8x1xf32>
    %17 = arith.mulf %13, %16 : vector<8x1xf32>
    %cst_8 = arith.constant 1.000000e+00 : f32
    %18 = vector.broadcast %cst_8 : f32 to vector<8x1xf32>
    %19 = arith.subf %18, %17 : vector<8x1xf32>
    %cst_9 = arith.constant 0.000000e+00 : f32
    %20 = vector.broadcast %cst_9 : f32 to vector<8x1xf32>
    %21 = arith.maximumf %20, %19 : vector<8x1xf32>
    %c8_i32 = arith.constant 8 : i32
    %22 = arith.muli %arg0, %c8_i32 : i32
    %23 = tpu.iota {dimensions = array<i32: 0>} : vector<8x1xi32>
    %24 = vector.broadcast %22 : i32 to vector<8x1xi32>
    %25 = arith.addi %24, %23 : vector<8x1xi32>
    %c2_i32 = arith.constant 2 : i32
    %26 = vector.broadcast %c2_i32 : i32 to vector<8x1xi32>
    %27 = arith.cmpi slt, %25, %26 : vector<8x1xi32>
    %cst_10 = arith.constant 0.000000e+00 : f32
    %28 = vector.broadcast %cst_10 : f32 to vector<8x1xf32>
    %29 = arith.select %27, %21, %28 : vector<8x1xi1>, vector<8x1xf32>
    %30 = vector.shape_cast %29 : vector<8x1xf32> to vector<1x8x1xf32>
    %cst_11 = arith.constant dense<0.000000e+00> : vector<1xf32>
    %31 = vector.multi_reduction <add>, %30, %cst_11 [1, 2] : vector<1x8x1xf32> to vector<1xf32>
    %32 = vector.shape_cast %31 : vector<1xf32> to vector<1x1x1xf32>
    %33 = vector.extract %32[0, 0, 0] : f32 from vector<1x1x1xf32>
    %cst_12 = arith.constant 0.000000e+00 : f32
    %34 = vector.broadcast %cst_12 : f32 to vector<8x1xf32>
    %35 = arith.select %27, %10, %34 : vector<8x1xi1>, vector<8x1xf32>
    %36 = vector.shape_cast %35 : vector<8x1xf32> to vector<1x8x1xf32>
    %cst_13 = arith.constant dense<0.000000e+00> : vector<1xf32>
    %37 = vector.multi_reduction <add>, %36, %cst_13 [1, 2] : vector<1x8x1xf32> to vector<1xf32>
    %38 = vector.shape_cast %37 : vector<1xf32> to vector<1x1x1xf32>
    %39 = vector.extract %38[0, 0, 0] : f32 from vector<1x1x1xf32>
    %40 = tpu.iota {dimensions = array<i32: 1>} : vector<1x16x128xi32>
    %c8_i32_14 = arith.constant 8 : i32
    %41 = vector.broadcast %c8_i32_14 : i32 to vector<1x16x128xi32>
    %42 = arith.cmpi slt, %40, %41 : vector<1x16x128xi32>
    %43 = vector.broadcast %33 : f32 to vector<1x16x128xf32>
    %44 = vector.broadcast %39 : f32 to vector<1x16x128xf32>
    %45 = arith.select %42, %43, %44 : vector<1x16x128xi1>, vector<1x16x128xf32>
    %c0_15 = arith.constant 0 : index
    %c0_16 = arith.constant 0 : index
    %c0_17 = arith.constant 0 : index
    %46 = vector.load %arg2[%c0_15, %c0_16, %c0_17] : memref<1x16x128xf32, #tpu.memory_space<vmem>>, vector<1x16x128xf32>
    tpu.vector_store %arg2[%c0_15, %c0_16, %c0_17], %45 {strides = array<i32>} : memref<1x16x128xf32, #tpu.memory_space<vmem>>, vector<1x16x128xf32>,
    return
  }
  func.func @transform_0(%arg0: i32) -> (i32, i32, i32) {
    %c0_i32 = arith.constant 0 : i32
    %c0_i32_0 = arith.constant 0 : i32
    %c0_i32_1 = arith.constant 0 : i32
    return %c0_i32, %arg0, %c0_i32_0 : i32, i32, i32
  }
  func.func @transform_1(%arg0: i32) -> (i32, i32, i32) {
    %c0_i32 = arith.constant 0 : i32
    %c0_i32_0 = arith.constant 0 : i32
    %c0_i32_1 = arith.constant 0 : i32
    return %arg0, %c0_i32, %c0_i32_0 : i32, i32, i32
  }
}

</mosaic_0001>

<bundles_post_ra>
// kernel: tpu_custom_call.1
= control target key start
LH: loop header
LB: loop body
LE: loop exit
PB: predicated region body
PF: predicated region fallthrough
CT: control target
= control target key end

     0   :  { %6 = vsyncpa [#allocation3], 0  ;;  %s192_s0 = inlined_call_operand.hbm [shape: f32[3,2,32], index: 0, kind: input, shape index: {}]   ;;  %s193_s1 = inlined_call_operand.hbm [shape: f32[1,16,128], index: 1, kind: output, shape index: {}]  }
   0x1   :  { %7 = vsyncpa [#allocation4], 0 }
   0x2   :  { %12 = vsyncadd [#allocation3], 288  ;;  %s17_s6 = sld [smem:[#allocation0]]   ;;  %s166_s7 = smov [#allocation2]  }
   0x3   :  { %s25_s8 = sshll.u32 %s166_s7, 4  ;;  %s167_s9 = smov 32   ;;  %s26_s8 = int_to_ptr.vmem [resolvable:$true] %s25_s8 }
   0x4   :  { %32 = sst [smem:[#allocation7]] %s167_s9  ;;  %s168_s10 = smov 128  }
   0x5   :  { %34 = sst [smem:[#allocation7 + $0x1]] %s168_s10  ;;  %s169_s11 = smov 1  }
   0x6   :  { %36 = sst [smem:[#allocation7 + $0x2]] %s169_s11  ;;  %s170_s14 = smov 2  }
   0x7   :  { %38 = sst [smem:[#allocation7 + $0x3]] %s167_s9  ;;  %s171_s15 = smov [#allocation3]  }
   0x8   :  { %s124_s12 = sshll.u32 %s17_s6, 26  ;;  %40 = sst [smem:[#allocation7 + $0x4]] %s167_s9 }
   0x9   :  { %s125_s13 = sadd.s32 134217728, %s124_s12  ;;  %42 = sst [smem:[#allocation7 + $0x5]] %s170_s14 }
   0xa   :  { %s172_s16 = smov 131072  }
   0xb   :  { %44 = dma.general %s192_s0, 96, %s26_s8, %s171_s15, %s172_s16, [#allocation7], %s125_s13, 0  }
   0xc   :  { %162 = dma.done.wait [#allocation3], 384  }
   0xd   :  { %163 = vsyncadd [#allocation3], 4294966912  ;;  %v48_v0 = vld [vmem:[#allocation2] sm:$0xff]  ;;  %v50_v1 = vld [vmem:[#allocation2 + $0x8] sm:$0xff]  ;;  %vm56_vm0 = vcmask 261120   ;;  %v70_v12 = vlaneseq  ;;  %vm76_vm2 = vcmask 7168  }
   0xe   :  { %v52_v2 = vld [vmem:[#allocation2 + $0x10] sm:$0xff]  ;;  %v53_v3 = vsub.f32 %v48_v0, %v50_v1  ;;  %s173_s19 = smov [#allocation5]  }
   0xf   :  { %v54_v4 = vsub.f32 %v48_v0, %v52_v2  ;;  %v71_v15 = vshrl.u32 %v70_v12, 7  ;;  %s112_s20 = sshll.u32 %s173_s19, 4  ;;  %s113_s20 = int_to_ptr.vmem [resolvable:$true] %s112_s20 }
  0x10   :  { %v55_v5 = vmul.f32 %v53_v3, %v53_v3  ;;  %s142_s22 = scalar_lea.vmem %s113_s20, 256  ;;  %p147_p1 = scmp.lt.s32.totalorder %s113_s20, %s113_s20 }
  0x11   :  { %v60_v6 = vmul.f32 %v54_v4, %v54_v4  ;;  %vm74_vm1 = vcmp.lt.s32.totalorder %v71_v15, 2  ;;  %p143_p0 = scmp.ne.s32.totalorder %s113_s20, %s142_s22  ;;  %p148_p2 = scmp.lt.s32.totalorder %s142_s22, %s142_s22 }
  0x12   :  { %v57_v7 = vsel %vm56_vm0, %v55_v5, 0.0 }
  0x13   :  { %58 = vadd.xlane.f32.xlu0 %v57_v7  ;;  %v61_v8 = vsel %vm56_vm0, %v60_v6, 0.0  ;;  %p149_p3 = por %p148_p2, %p147_p1 }
  0x15   :  { %p150_p4 = pnand %p149_p3, %p143_p0 }
  0x17   :  { %62 = vadd.xlane.f32.xlu0 %v61_v8 }
  0x9c   :  { %v59_v9 = vpop.xlane.xlu0 %58 }
  0x9d   :  { %v64_v10 = vadd.f32 0.01, %v59_v9  ;;  %v87_v20 = vsel %vm74_vm1, %v59_v9, 0.0 }
  0x9e   :  { %v88_v21 = vsel %vm76_vm2, %v87_v20, 0.0 }
  0x9f   :  { %140 = vrcp.f32 %v64_v10 }
  0xa0   :  { %v63_v11 = vpop.xlane.xlu0 %62 }
  0xac   :  { %v141_v13 = vpop.eup %140 }
  0xad   :  { %v66_v14 = vmul.f32 %v141_v13, %v63_v11 }
  0xaf   :  { %v67_v16 = vsub.f32 1.0, %v66_v14 }
  0xb1   :  { %v68_v17 = vmax.f32 %v67_v16, 0.0 }
  0xb3   :  { %v75_v18 = vsel %vm74_vm1, %v68_v17, 0.0 }
  0xb4   :  { %v77_v19 = vsel %vm76_vm2, %v75_v18, 0.0 }
  0xb5   :  { %78 = vadd.xlane.f32.xlu1 %v77_v19 }
  0xb9   :  { %89 = vadd.xlane.f32.xlu1 %v88_v21 }
 0x13e   :  { %v79_v22 = vpop.xlane.xlu1 %78 }
 0x13f   :  { %v80_v23 = vrot.slane %v79_v22, 4 }
 0x141   :  { %v81_v24 = vadd.f32 %v80_v23, %v79_v22 }
 0x142   :  { %v90_v25 = vpop.xlane.xlu1 %89 }
 0x143   :  { %v82_v26 = vrot.slane %v81_v24, 2  ;;  %v91_v27 = vrot.slane %v90_v25, 4 }
 0x145   :  { %v92_v28 = vadd.f32 %v91_v27, %v90_v25  ;;  %v83_v29 = vadd.f32 %v82_v26, %v81_v24 }
 0x147   :  { %v93_v30 = vrot.slane %v92_v28, 2  ;;  %v84_v31 = vrot.slane %v83_v29, 1 }
 0x149   :  { %v94_v32 = vadd.f32 %v93_v30, %v92_v28  ;;  %v85_v33 = vadd.f32 %v84_v31, %v83_v29 }
 0x14b   :  { %126 = vpush %v85_v33  ;;  %v95_v34 = vrot.slane %v94_v32, 1 }
 0x14d   :  { %v96_v35 = vadd.f32 %v95_v34, %v94_v32 }
 0x14f   :  { %128 = vpush %v96_v35 }
 0x17c   :  { %s127_s0 = spop %126 }
 0x17d   :  { %v101_v36 = vstv %s127_s0 }
 0x17e   :  { %105 = vst [vmem:[#allocation5] sm:$0xff] %v101_v36 }
 0x180   :  { %s129_s21 = spop %128 }
 0x181   :  { %v102_v37 = vstv %s129_s21 }
 0x182   :  { %106 = vst [vmem:[#allocation5 + $0x8] sm:$0xff] %v102_v37 }
 0x183   :  { %153 = shalt.err (!%p150_p4)
}
 0x184   :  { %s174_s23 = smov 128   ;;  %s175_s24 = smov 8  }
 0x185   :  { %118 = dma.vmem_to_hbm [thread:$0]  %s113_s20, 256, %s193_s1, [#allocation4], %s174_s23, %s174_s23, %s175_s24  }
 0x186   :  { %164 = dma.done.wait [#allocation4], 256  }
 0x187   :  { %165 = vsyncadd [#allocation4], 4294967040 }
 0x188   :  { %122 = vsyncpa [#allocation3], 1 }
 0x189   :  { %123 = vsyncpa [#allocation4], 1 }

</bundles_post_ra>
